<compile_context>
chip_gen: v7x
topology: tpu7x:2x2x1
jax: 0.10.0
libtpu: 0.0.40
codegen_flags: <defaults>
</compile_context>

<pallas_src>
import jax
import jax.numpy as jnp
from jax import lax
from jax.experimental import pallas as pl
from jax.experimental.pallas import tpu as pltpu


def _round_up(x, m):
    return (x + m - 1) // m * m


def _siamese_kernel(p_ref, pm_ref, cw_ref, cb_ref, fw_ref, fb_ref, o_ref):
    """One original input (N samples) per grid step.

    p_ref : (1, N*P_pad, CKK_pad) bf16  flattened, zero-padded im2col patches
    pm_ref: (N, N*P_pad)          f32   pooling matrix (1/P_true on valid rows)
    cw_ref: (CKK_pad, F)          bf16  conv weight (flattened, zero-padded rows)
    cb_ref: (1, F)                f32   conv bias
    fw_ref: (F, D)                bf16  fc weight
    fb_ref: (1, D)                f32   fc bias
    o_ref : (1, N, D)             f32   L2-normalized embeddings
    """
    # conv3x3 as one big patch matmul on the MXU (bf16 in, f32 accumulate)
    conv = jnp.dot(p_ref[0], cw_ref[...],
                   preferred_element_type=jnp.float32)          # (N*P_pad, F)
    conv = jnp.maximum(conv + cb_ref[...], 0.0)                 # bias + ReLU
    # global average pool via pooling-matrix matmul: excludes padded rows and
    # divides by the true patch count.  Stays on the MXU (free vs. XLU reduce).
    pooled = jnp.dot(pm_ref[...], conv,
                     preferred_element_type=jnp.float32)        # (N, F)
    # fully-connected head
    emb = jnp.dot(pooled.astype(fw_ref.dtype), fw_ref[...],
                  preferred_element_type=jnp.float32) + fb_ref[...]   # (N, D)
    # L2 normalize (torch.nn.functional.normalize semantics, eps=1e-12)
    sumsq = jnp.sum(emb * emb, axis=-1, keepdims=True)
    o_ref[0] = emb * lax.rsqrt(jnp.maximum(sumsq, 1e-24))


def _im2col_nhwc(x, kh, kw):
    """Valid-mode patch extraction. x: (N,H,W,C) -> (N, OH*OW, KH*KW*C)."""
    N, H, W, C = x.shape
    oh, ow = H - kh + 1, W - kw + 1
    cols = []
    for i in range(kh):
        for j in range(kw):
            cols.append(x[:, i:i + oh, j:j + ow, :])            # (N, OH, OW, C)
    p = jnp.stack(cols, axis=3)                                 # (N, OH, OW, KH*KW, C)
    return p.reshape(N, oh * ow, kh * kw * C)


def siamese_forward(x1, x2, params):
    """SiameseNetwork.forward: shared-weight embedding of both inputs, fused."""
    cw, cb, fw, fb = params
    kh = kw = 3
    N = x1.shape[0]

    # Fuse both inputs into one batch: grid step 0 handles x1, step 1 handles x2.
    x = jnp.concatenate([x1, x2], axis=0)                       # (2N, C, H, W)
    x = jnp.transpose(x, (0, 2, 3, 1)).astype(jnp.float32)      # NCHW -> NHWC
    patches = _im2col_nhwc(x, kh, kw)                           # (2N, P, CKK)
    _, P, CKK = patches.shape
    F = cw.shape[1]
    D = fw.shape[1]

    # Alignment padding: P -> multiple of 8 sublanes, CKK -> 32 lanes.
    P_pad = _round_up(P, 8)
    CKK_pad = _round_up(CKK, 32)
    patches = jnp.pad(patches, ((0, 0), (0, P_pad - P), (0, CKK_pad - CKK)))
    # Flatten the per-sample patch axis so each grid step does one 2-D matmul.
    NP = N * P_pad
    patches = patches.reshape(2, NP, CKK_pad).astype(jnp.bfloat16)

    # Zero-padded / bf16 weights (padded patch columns are zero, so padded cw
    # rows contribute nothing).
    cw_p = jnp.pad(cw, ((0, CKK_pad - CKK), (0, 0))).astype(jnp.bfloat16)
    fw_b = fw.astype(jnp.bfloat16)

    # Pooling matrix: pm[s, j] = 1/P if patch row j belongs to sample s and is
    # a real (non-padded) patch, else 0.
    col = jnp.arange(NP)
    sample_id = (col // P_pad)[None, :]                         # (1, NP)
    pos_id = (col % P_pad)[None, :]                             # (1, NP)
    sel = (sample_id == jnp.arange(N)[:, None]) & (pos_id < P)  # (N, NP)
    pm = jnp.where(sel, 1.0 / P, 0.0).astype(jnp.float32)

    out = pl.pallas_call(
        _siamese_kernel,
        out_shape=jax.ShapeDtypeStruct((2, N, D), jnp.float32),
        grid_spec=pltpu.PrefetchScalarGridSpec(
            num_scalar_prefetch=0,
            grid=(2,),
            in_specs=[
                pl.BlockSpec((1, NP, CKK_pad), lambda g: (g, 0, 0)),
                pl.BlockSpec((N, NP), lambda g: (0, 0)),
                pl.BlockSpec((CKK_pad, F), lambda g: (0, 0)),
                pl.BlockSpec((1, F), lambda g: (0, 0)),
                pl.BlockSpec((F, D), lambda g: (0, 0)),
                pl.BlockSpec((1, D), lambda g: (0, 0)),
            ],
            out_specs=pl.BlockSpec((1, N, D), lambda g: (g, 0, 0)),
        ),
        compiler_params=pltpu.CompilerParams(
            dimension_semantics=("parallel",)),
    )(patches, pm, cw_p, cb, fw_b, fb)

    return out[0], out[1]                                       # (N, D), (N, D)


def _reference_embed(x_nchw, params):
    """Pure-JAX f32 reference of the synthetic embedder."""
    cw, cb, fw, fb = params
    x = jnp.transpose(x_nchw, (0, 2, 3, 1)).astype(jnp.float32)
    patches = _im2col_nhwc(x, 3, 3)                             # (N, P, CKK)
    conv = jnp.maximum(jnp.einsum('npk,kf->npf', patches, cw) + cb, 0.0)
    pooled = conv.mean(axis=1)                                  # (N, F)
    emb = pooled @ fw + fb                                      # (N, D)
    nrm = jnp.maximum(jnp.linalg.norm(emb, axis=-1, keepdims=True), 1e-12)
    return emb / nrm


def init_params(key, in_ch=3, kh=3, kw=3, conv_ch=32, emb_dim=64):
    k1, k2, k3, k4 = jax.random.split(key, 4)
    ckk = kh * kw * in_ch
    cw = jax.random.normal(k1, (ckk, conv_ch), jnp.float32) * 0.1   # conv weight (flattened)
    cb = jax.random.normal(k2, (1, conv_ch), jnp.float32) * 0.01
    fw = jax.random.normal(k3, (conv_ch, emb_dim), jnp.float32) * 0.1
    fb = jax.random.normal(k4, (1, emb_dim), jnp.float32) * 0.01
    return cw, cb, fw, fb


if __name__ == "__main__":
    key = jax.random.PRNGKey(0)
    kx1, kx2 = jax.random.split(key)

    # NCHW inputs, like the PyTorch module expects.
    x1 = jax.random.normal(kx1, (2, 3, 16, 16), jnp.float32)
    x2 = jax.random.normal(kx2, (2, 3, 16, 16), jnp.float32)

    params = init_params(jax.random.PRNGKey(42))

    emb1, emb2 = jax.jit(siamese_forward)(x1, x2, params)
    jax.block_until_ready((emb1, emb2))

    assert emb1.shape == (2, 64) and emb2.shape == (2, 64)
    # embeddings are L2-normalized
    assert jnp.allclose(jnp.linalg.norm(emb1, axis=-1), 1.0, atol=1e-5)
    assert jnp.allclose(jnp.linalg.norm(emb2, axis=-1), 1.0, atol=1e-5)
    # agrees with the pure-JAX f32 reference up to bf16 matmul error
    ref1 = _reference_embed(x1, params)
    ref2 = _reference_embed(x2, params)
    assert jnp.allclose(emb1, ref1, atol=5e-2)
    assert jnp.allclose(emb2, ref2, atol=5e-2)

    print("KERNEL_OK")
</pallas_src>

<mosaic_0001>
module attributes {stable_mosaic.version = 11 : i64} {
  func.func @_siamese_kernel(%arg0: i32, %arg1: memref<1x400x32xbf16, #tpu.memory_space<vmem>>, %arg2: memref<2x400xf32, #tpu.memory_space<vmem>>, %arg3: memref<32x32xbf16, #tpu.memory_space<vmem>>, %arg4: memref<1x32xf32, #tpu.memory_space<vmem>>, %arg5: memref<32x64xbf16, #tpu.memory_space<vmem>>, %arg6: memref<1x64xf32, #tpu.memory_space<vmem>>, %arg7: memref<1x2x64xf32, #tpu.memory_space<vmem>>) attributes {dimension_semantics = [#tpu.dimension_semantics<parallel>], iteration_bounds = array<i64: 2>, scalar_prefetch = 0 : i64, scratch_operands = 0 : i64, tpu.core_type = #tpu.core_type<tc>, window_params = [{transform_indices = @transform_0, window_bounds = array<i64: 1, 400, 32>}, {pipeline_mode = #tpu.pipeline_mode<synchronous>, transform_indices = @transform_1, window_bounds = array<i64: 2, 400>}, {pipeline_mode = #tpu.pipeline_mode<synchronous>, transform_indices = @transform_2, window_bounds = array<i64: 32, 32>}, {pipeline_mode = #tpu.pipeline_mode<synchronous>, transform_indices = @transform_3, window_bounds = array<i64: 1, 32>}, {pipeline_mode = #tpu.pipeline_mode<synchronous>, transform_indices = @transform_4, window_bounds = array<i64: 32, 64>}, {pipeline_mode = #tpu.pipeline_mode<synchronous>, transform_indices = @transform_5, window_bounds = array<i64: 1, 64>}, {transform_indices = @transform_6, window_bounds = array<i64: 1, 2, 64>}]} {
    %c0 = arith.constant 0 : index
    %c0_0 = arith.constant 0 : index
    %c0_1 = arith.constant 0 : index
    %0 = vector.load %arg1[%c0, %c0_0, %c0_1] : memref<1x400x32xbf16, #tpu.memory_space<vmem>>, vector<1x400x32xbf16>
    %1 = vector.shape_cast %0 : vector<1x400x32xbf16> to vector<400x32xbf16>
    %c0_2 = arith.constant 0 : index
    %c0_3 = arith.constant 0 : index
    %2 = vector.load %arg3[%c0_2, %c0_3] : memref<32x32xbf16, #tpu.memory_space<vmem>>, vector<32x32xbf16>
    %cst = arith.constant dense<0.000000e+00> : vector<400x32xf32>
    %3 = tpu.matmul %1, %2, %cst {dimension_numbers = #tpu.dot_dimension_numbers<[1], [0], [0], [1], [0, 0, 1, 1], [], []>} : vector<400x32xbf16>, vector<32x32xbf16>, vector<400x32xf32> -> vector<400x32xf32>
    %c0_4 = arith.constant 0 : index
    %c0_5 = arith.constant 0 : index
    %4 = vector.load %arg4[%c0_4, %c0_5] : memref<1x32xf32, #tpu.memory_space<vmem>>, vector<1x32xf32>
    %5 = vector.broadcast %4 : vector<1x32xf32> to vector<400x32xf32>
    %6 = arith.addf %3, %5 : vector<400x32xf32>
    %cst_6 = arith.constant 0.000000e+00 : f32
    %7 = vector.broadcast %cst_6 : f32 to vector<400x32xf32>
    %8 = arith.maximumf %6, %7 : vector<400x32xf32>
    %c0_7 = arith.constant 0 : index
    %c0_8 = arith.constant 0 : index
    %9 = vector.load %arg2[%c0_7, %c0_8] : memref<2x400xf32, #tpu.memory_space<vmem>>, vector<2x400xf32>
    %cst_9 = arith.constant dense<0.000000e+00> : vector<2x32xf32>
    %10 = tpu.matmul %9, %8, %cst_9 {dimension_numbers = #tpu.dot_dimension_numbers<[1], [0], [0], [1], [0, 0, 1, 1], [], []>} : vector<2x400xf32>, vector<400x32xf32>, vector<2x32xf32> -> vector<2x32xf32>
    %11 = arith.truncf %10 : vector<2x32xf32> to vector<2x32xbf16>
    %c0_10 = arith.constant 0 : index
    %c0_11 = arith.constant 0 : index
    %12 = vector.load %arg5[%c0_10, %c0_11] : memref<32x64xbf16, #tpu.memory_space<vmem>>, vector<32x64xbf16>
    %cst_12 = arith.constant dense<0.000000e+00> : vector<2x64xf32>
    %13 = tpu.matmul %11, %12, %cst_12 {dimension_numbers = #tpu.dot_dimension_numbers<[1], [0], [0], [1], [0, 0, 1, 1], [], []>} : vector<2x32xbf16>, vector<32x64xbf16>, vector<2x64xf32> -> vector<2x64xf32>
    %c0_13 = arith.constant 0 : index
    %c0_14 = arith.constant 0 : index
    %14 = vector.load %arg6[%c0_13, %c0_14] : memref<1x64xf32, #tpu.memory_space<vmem>>, vector<1x64xf32>
    %15 = vector.broadcast %14 : vector<1x64xf32> to vector<2x64xf32>
    %16 = arith.addf %13, %15 : vector<2x64xf32>
    %17 = arith.mulf %16, %16 : vector<2x64xf32>
    %cst_15 = arith.constant dense<0.000000e+00> : vector<2xf32>
    %18 = vector.multi_reduction <add>, %17, %cst_15 [1] : vector<2x64xf32> to vector<2xf32>
    %19 = vector.shape_cast %18 : vector<2xf32> to vector<2x1xf32>
    %cst_16 = arith.constant 1.000000e-24 : f32
    %20 = vector.broadcast %cst_16 : f32 to vector<2x1xf32>
    %21 = arith.maximumf %19, %20 : vector<2x1xf32>
    %22 = math.rsqrt %21 : vector<2x1xf32>
    %23 = vector.broadcast %22 : vector<2x1xf32> to vector<2x64xf32>
    %24 = arith.mulf %16, %23 : vector<2x64xf32>
    %c0_17 = arith.constant 0 : index
    %c0_18 = arith.constant 0 : index
    %c0_19 = arith.constant 0 : index
    %25 = vector.load %arg7[%c0_17, %c0_18, %c0_19] : memref<1x2x64xf32, #tpu.memory_space<vmem>>, vector<1x2x64xf32>
    %26 = vector.shape_cast %25 : vector<1x2x64xf32> to vector<2x64xf32>
    %27 = vector.shape_cast %24 : vector<2x64xf32> to vector<1x2x64xf32>
    tpu.vector_store %arg7[%c0_17, %c0_18, %c0_19], %27 {strides = array<i32>} : memref<1x2x64xf32, #tpu.memory_space<vmem>>, vector<1x2x64xf32>,
    return
  }
  func.func @transform_0(%arg0: i32) -> (i32, i32, i32) {
    %c0_i32 = arith.constant 0 : i32
    %c0_i32_0 = arith.constant 0 : i32
    %c0_i32_1 = arith.constant 0 : i32
    return %arg0, %c0_i32, %c0_i32_0 : i32, i32, i32
  }
  func.func @transform_1(%arg0: i32) -> (i32, i32) {
    %c0_i32 = arith.constant 0 : i32
    %c0_i32_0 = arith.constant 0 : i32
    %c0_i32_1 = arith.constant 0 : i32
    return %c0_i32, %c0_i32_0 : i32, i32
  }
  func.func @transform_2(%arg0: i32) -> (i32, i32) {
    %c0_i32 = arith.constant 0 : i32
    %c0_i32_0 = arith.constant 0 : i32
    %c0_i32_1 = arith.constant 0 : i32
    return %c0_i32, %c0_i32_0 : i32, i32
  }
  func.func @transform_3(%arg0: i32) -> (i32, i32) {
    %c0_i32 = arith.constant 0 : i32
    %c0_i32_0 = arith.constant 0 : i32
    %c0_i32_1 = arith.constant 0 : i32
    return %c0_i32, %c0_i32_0 : i32, i32
  }
  func.func @transform_4(%arg0: i32) -> (i32, i32) {
    %c0_i32 = arith.constant 0 : i32
    %c0_i32_0 = arith.constant 0 : i32
    %c0_i32_1 = arith.constant 0 : i32
    return %c0_i32, %c0_i32_0 : i32, i32
  }
  func.func @transform_5(%arg0: i32) -> (i32, i32) {
    %c0_i32 = arith.constant 0 : i32
    %c0_i32_0 = arith.constant 0 : i32
    %c0_i32_1 = arith.constant 0 : i32
    return %c0_i32, %c0_i32_0 : i32, i32
  }
  func.func @transform_6(%arg0: i32) -> (i32, i32, i32) {
    %c0_i32 = arith.constant 0 : i32
    %c0_i32_0 = arith.constant 0 : i32
    %c0_i32_1 = arith.constant 0 : i32
    return %arg0, %c0_i32, %c0_i32_0 : i32, i32, i32
  }
}

</mosaic_0001>

<bundles_post_ra>
// kernel: siamese_forward.1
= control target key start
LH: loop header
LB: loop body
LE: loop exit
PB: predicated region body
PF: predicated region fallthrough
CT: control target
= control target key end

     0   :  { %s1501_s21 = smov 0   ;;  %s1776_s0 = inlined_call_operand.vmem [shape: bf16[2,400,32], index: 0, kind: input, shape index: {}]   ;;  %s1777_s1 = inlined_call_operand.vmem [shape: f32[2,400], index: 1, kind: input, shape index: {}]   ;;  %s1778_s2 = inlined_call_operand.vmem [shape: bf16[32,32], index: 2, kind: input, shape index: {}]   ;;  %s1779_s3 = inlined_call_operand.vmem [shape: f32[1,32], index: 3, kind: input, shape index: {}]   ;;  %s1780_s4 = inlined_call_operand.vmem [shape: bf16[32,64], index: 4, kind: input, shape index: {}]   ;;  %s1781_s5 = inlined_call_operand.vmem [shape: f32[1,64], index: 5, kind: input, shape index: {}]   ;;  %s1782_s6 = inlined_call_operand.vmem [shape: f32[2,2,64], index: 6, kind: output, shape index: {}]  }
   0x1 LB: > { %s1102_s22 = sadd.s32 4294967295, %s1460_s21   ;;  %p1106_p0 = scmp.ge.s32.totalorder %s1460_s21, 1  ;;  %s1460_s21 = sphi %s1501_s21, %s16_s21  }
   0x2   : > { %p212_p1 = scmp.lt.s32.totalorder %s1460_s21, 3 }
   0x4   : > { %p213_p2 = pnand %p1106_p0, %p212_p1 }
   0x5   : > { %v1422_v0 = vld [vmem:[%s1778_s2] sm:$0xff] (!%p213_p2)   ;;  %v1462_v1 = vmov (!%p213_p2), 0.0   ;;  %v1423_v2 = vld [vmem:[%s1778_s2 + $0x8] sm:$0xff] (!%p213_p2)   ;;  %vm1463_vm0 = vmmov (!%p213_p2), 0   ;;  %p241_p3 = scmp.lt.s32.totalorder (!%p213_p2), %s1102_s22, 1  ;;  %vm449_vm1 = vcmask (!%p213_p2), 261120   ;;  %v814_v30 = vlaneseq (!%p213_p2) }
   0x6   : > { %216 = sbr.rel (%p213_p2) target bundleno = 989 (0x3dd), region = 44  ;;  %1234 = vmatprep.subr.bf16.mxu0 (!%p213_p2), %v1462_v1  ;;  %1405 = vmatprep.subr.bf16.mxu1 (!%p213_p2), %v1462_v1  ;;  %v1464_v28 = vmov (!%p213_p2), 1983009808   ;;  %v1630_v33 = vld [vmem:[%s1779_s3] ss:$0 sm:$0xff] (!%p213_p2)  ;;  %vm830_vm2 = vcmask (!%p213_p2), 130048  }
   0x7   : > { %1235 = vmatpush3.bf16.msra.mxu0 (!%p213_p2), %v1422_v0  ;;  %1238 = vmatprep.mubr.msk.bf16.mxu0 (!%p213_p2), %vm1463_vm0, %v1462_v1  ;;  %v812_v29 = vunpack.c.l.s4 (!%p213_p2), %v1464_v28  ;;  %v815_v32 = vshrl.u32 (!%p213_p2), %v814_v30, 7  ;;  %v1637_v35 = vld [vmem:[%s1777_s1] sm:$0xff] (!%p213_p2)  ;;  %vm1041_vm3 = vcmask (!%p213_p2), 517120  }
   0x8   : > { %1236 = vmatprep.subr.bf16.mxu0 (!%p213_p2), %v1462_v1  ;;  %1407 = vmatpush3.bf16.msra.mxu1 (!%p213_p2), %v1422_v0 }
   0x9   : > { %1406 = vmatprep.subr.bf16.mxu1 (!%p213_p2), %v1462_v1  ;;  %1302 = vmatprep.mubr.msk.bf16.mxu1 (!%p213_p2), %vm1463_vm0, %v1462_v1  ;;  %v813_v31 = vunpack.c.0.s8 (!%p213_p2), %v812_v29 }
   0xb   : > { %1237 = vmatpush3.bf16.msra.mxu0 (!%p213_p2), %v1423_v2  ;;  %v1632_v34 = vsub.s32 (!%p213_p2), %v813_v31, %v815_v32 }
   0xc   : > { %1408 = vmatpush3.bf16.msra.mxu1 (!%p213_p2), %v1423_v2 }
   0xd   : > { %s1784_s22 = smov (!%p241_p3, %s1102_s22), 1  ;;  %v1641_v37 = vrot.slane %v1637_v35, %v1632_v34 }
   0xe   : > { %s1409_s27 = smul.u32 200, %s1784_s22  ;;  %s1108_s17 = sshll.u32 %s1784_s22, 1 }
   0xf   : > { %v825_v41 = vcombine.high %v1641_v37, %v1641_v37  ;;  %s249_s20 = scalar_lea.vmem %s1782_s6, %s1108_s17 }
  0x10   : > { %s1529_s30 = scalar_lea.vmem %s1776_s0, %s1409_s27 }
  0x11   : > { %v1424_v3 = vld [vmem:[%s1529_s30] sm:$0xff]   ;;  %v1425_v4 = vld [vmem:[%s1529_s30 + $0x8] sm:$0xff]   ;;  %v1426_v6 = vld [vmem:[%s1529_s30 + $0x10] sm:$0xff]  }
  0x12   : > { %1239 = vmatmul.mubr.msk.bf16.vlgmr.msra.gmra.mrb[0].mxu0 %vm449_vm1, %v1424_v3  ;;  %v1436_v5 = vld [vmem:[%s1529_s30 + $0x80] sm:$0xff]   ;;  %v1438_v7 = vld [vmem:[%s1529_s30 + $0x88] sm:$0xff]   ;;  %v1427_v8 = vld [vmem:[%s1529_s30 + $0x18] sm:$0xff]  }
  0x13   : > { %1242 = vmatprep.mubr.msk.bf16.mxu0 %vm1463_vm0, %v1462_v1  ;;  %1303 = vmatmul.mubr.msk.bf16.vlgmr.msra.gmra.mrb[0].mxu1 %vm449_vm1, %v1436_v5  ;;  %v1440_v9 = vld [vmem:[%s1529_s30 + $0x90] sm:$0xff]   ;;  %v1428_v10 = vld [vmem:[%s1529_s30 + $0x20] sm:$0xff]   ;;  %v1442_v11 = vld [vmem:[%s1529_s30 + $0x98] sm:$0xff]  }
  0x14   : > { %1306 = vmatprep.mubr.msk.bf16.mxu1 %vm1463_vm0, %v1462_v1  ;;  %v1429_v12 = vld [vmem:[%s1529_s30 + $0x28] sm:$0xff]   ;;  %v1444_v13 = vld [vmem:[%s1529_s30 + $0xa0] sm:$0xff]   ;;  %v1430_v14 = vld [vmem:[%s1529_s30 + $0x30] sm:$0xff]  }
  0x15   : > { %v1445_v15 = vld [vmem:[%s1529_s30 + $0xa8] sm:$0xff]   ;;  %v1431_v16 = vld [vmem:[%s1529_s30 + $0x38] sm:$0xff]   ;;  %v1446_v17 = vld [vmem:[%s1529_s30 + $0xb0] sm:$0xff]  }
  0x16   : > { %v1432_v18 = vld [vmem:[%s1529_s30 + $0x40] sm:$0xff]   ;;  %v1447_v19 = vld [vmem:[%s1529_s30 + $0xb8] sm:$0xff]   ;;  %v1433_v20 = vld [vmem:[%s1529_s30 + $0x48] sm:$0xff]  }
  0x17   : > { %v1448_v21 = vld [vmem:[%s1529_s30 + $0xc0] sm:$0xff]   ;;  %v1434_v22 = vld [vmem:[%s1529_s30 + $0x50] sm:$0xff]   ;;  %v1435_v23 = vld [vmem:[%s1529_s30 + $0x58] sm:$0xff]  }
  0x18   : > { %v1437_v24 = vld [vmem:[%s1529_s30 + $0x60] sm:$0xff]   ;;  %v1439_v25 = vld [vmem:[%s1529_s30 + $0x68] sm:$0xff]   ;;  %v1441_v26 = vld [vmem:[%s1529_s30 + $0x70] sm:$0xff]  }
  0x19   : > { %v1443_v27 = vld [vmem:[%s1529_s30 + $0x78] sm:$0xff]  }
  0x1a   : > { %1243 = vmatmul.mubr.msk.bf16.gmra.mrb[4].mxu0 %vm449_vm1, %v1425_v4 }
  0x1b   : > { %1246 = vmatprep.mubr.msk.bf16.mxu0 %vm1463_vm0, %v1462_v1  ;;  %1307 = vmatmul.mubr.msk.bf16.gmra.mrb[4].mxu1 %vm449_vm1, %v1438_v7 }
  0x1c   : > { %1310 = vmatprep.mubr.msk.bf16.mxu1 %vm1463_vm0, %v1462_v1 }
  0x22   : > { %1247 = vmatmul.mubr.msk.bf16.gmra.mrb[8].mxu0 %vm449_vm1, %v1426_v6 }
  0x23   : > { %1250 = vmatprep.mubr.msk.bf16.mxu0 %vm1463_vm0, %v1462_v1  ;;  %1311 = vmatmul.mubr.msk.bf16.gmra.mrb[8].mxu1 %vm449_vm1, %v1440_v9 }
  0x24   : > { %1314 = vmatprep.mubr.msk.bf16.mxu1 %vm1463_vm0, %v1462_v1 }
  0x2a   : > { %1251 = vmatmul.mubr.msk.bf16.gmra.mrb[12].mxu0 %vm449_vm1, %v1427_v8 }
  0x2b   : > { %1254 = vmatprep.mubr.msk.bf16.mxu0 %vm1463_vm0, %v1462_v1  ;;  %1315 = vmatmul.mubr.msk.bf16.gmra.mrb[12].mxu1 %vm449_vm1, %v1442_v11 }
  0x2c   : > { %1318 = vmatprep.mubr.msk.bf16.mxu1 %vm1463_vm0, %v1462_v1 }
  0x32   : > { %1255 = vmatmul.mubr.msk.bf16.gmra.mrb[16].mxu0 %vm449_vm1, %v1428_v10 }
  0x33   : > { %1258 = vmatprep.mubr.msk.bf16.mxu0 %vm1463_vm0, %v1462_v1  ;;  %1319 = vmatmul.mubr.msk.bf16.gmra.mrb[16].mxu1 %vm449_vm1, %v1444_v13 }
  0x34   : > { %1322 = vmatprep.mubr.msk.bf16.mxu1 %vm1463_vm0, %v1462_v1 }
  0x3a   : > { %1259 = vmatmul.mubr.msk.bf16.gmra.mrb[20].mxu0 %vm449_vm1, %v1429_v12 }
  0x3b   : > { %1262 = vmatprep.mubr.msk.bf16.mxu0 %vm1463_vm0, %v1462_v1  ;;  %1323 = vmatmul.mubr.msk.bf16.gmra.mrb[20].mxu1 %vm449_vm1, %v1445_v15 }
  0x3c   : > { %1326 = vmatprep.mubr.msk.bf16.mxu1 %vm1463_vm0, %v1462_v1 }
  0x42   : > { %1263 = vmatmul.mubr.msk.bf16.gmra.mrb[24].mxu0 %vm449_vm1, %v1430_v14 }
  0x43   : > { %1266 = vmatprep.mubr.msk.bf16.mxu0 %vm1463_vm0, %v1462_v1  ;;  %1327 = vmatmul.mubr.msk.bf16.gmra.mrb[24].mxu1 %vm449_vm1, %v1446_v17 }
  0x44   : > { %1330 = vmatprep.mubr.msk.bf16.mxu1 %vm1463_vm0, %v1462_v1 }
  0x4a   : > { %1267 = vmatmul.mubr.msk.bf16.gmra.mrb[28].mxu0 %vm449_vm1, %v1431_v16 }
  0x4b   : > { %1270 = vmatprep.mubr.msk.bf16.mxu0 %vm1463_vm0, %v1462_v1  ;;  %1331 = vmatmul.mubr.msk.bf16.gmra.mrb[28].mxu1 %vm449_vm1, %v1447_v19 }
  0x4c   : > { %1334 = vmatprep.mubr.msk.bf16.mxu1 %vm1463_vm0, %v1462_v1 }
  0x52   : > { %1271 = vmatmul.mubr.msk.bf16.gmra.mrb[32].mxu0 %vm449_vm1, %v1432_v18 }
  0x53   : > { %1274 = vmatprep.mubr.msk.bf16.mxu0 %vm1463_vm0, %v1462_v1  ;;  %1335 = vmatmul.mubr.msk.bf16.gmra.mrb[32].mxu1 %vm449_vm1, %v1448_v21 }
  0x54   : > { %897 = vmatprep.mubr.f32.mxu1 %v825_v41  ;;  %v810_v41 = vcombine.high %v1637_v35, %v1637_v35 }
  0x5a   : > { %1275 = vmatmul.mubr.msk.bf16.gmra.mrb[36].mxu0 %vm449_vm1, %v1433_v20 }
  0x5b   : > { %1278 = vmatprep.mubr.msk.bf16.mxu0 %vm1463_vm0, %v1462_v1 }
  0x62   : > { %1279 = vmatmul.mubr.msk.bf16.gmra.mrb[40].mxu0 %vm449_vm1, %v1434_v22 }
  0x63   : > { %1282 = vmatprep.mubr.msk.bf16.mxu0 %vm1463_vm0, %v1462_v1 }
  0x6a   : > { %1283 = vmatmul.mubr.msk.bf16.gmra.mrb[44].mxu0 %vm449_vm1, %v1435_v23 }
  0x6b   : > { %1286 = vmatprep.mubr.msk.bf16.mxu0 %vm1463_vm0, %v1462_v1 }
  0x72   : > { %1287 = vmatmul.mubr.msk.bf16.gmra.mrb[48].mxu0 %vm449_vm1, %v1437_v24 }
  0x73   : > { %1290 = vmatprep.mubr.msk.bf16.mxu0 %vm1463_vm0, %v1462_v1 }
  0x7a   : > { %1291 = vmatmul.mubr.msk.bf16.gmra.mrb[52].mxu0 %vm449_vm1, %v1439_v25 }
  0x7b   : > { %1294 = vmatprep.mubr.msk.bf16.mxu0 %vm1463_vm0, %v1462_v1 }
  0x82   : > { %1295 = vmatmul.mubr.msk.bf16.gmra.mrb[56].mxu0 %vm449_vm1, %v1441_v26 }
  0x83   : > { %1298 = vmatprep.mubr.msk.bf16.mxu0 %vm1463_vm0, %v1462_v1 }
  0x8a   : > { %1299 = vmatmul.mubr.msk.bf16.gmra.mrb[60].mxu0 %vm449_vm1, %v1443_v27 }
  0xe5   : > { %v559_v36 = vpop.f32.mrb[0].mxu0 }
  0xe6   : > { %v560_v38 = vadd.f32 %v1630_v33, %v559_v36  ;;  %v1240_v39 = vpop.f32.mrb[1].mxu0  ;;  %v687_v53 = vpop.f32.mrb[0].mxu1 }
  0xe7   : > { %v562_v40 = vpop.f32.mrb[2].mxu0  ;;  %v688_v56 = vadd.f32 %v1630_v33, %v687_v53  ;;  %v1304_v57 = vpop.f32.mrb[1].mxu1 }
  0xe8   : > { %v563_v42 = vadd.f32 %v1630_v33, %v562_v40  ;;  %v1241_v43 = vpop.f32.mrb[3].mxu0  ;;  %v758_v44 = vmax.f32 %v560_v38, 0.0  ;;  %v690_v58 = vpop.f32.mrb[2].mxu1 }
  0xe9   : > { %v790_v60 = vmax.f32 %v688_v56, 0.0  ;;  %v691_v61 = vadd.f32 %v1630_v33, %v690_v58  ;;  %v1305_v62 = vpop.f32.mrb[3].mxu1 }
  0xea   : > { %v759_v45 = vmax.f32 %v563_v42, 0.0 }
  0xeb   : > { %v791_v3 = vmax.f32 %v691_v61, 0.0 }
  0xec   : > { %v1647_v46 = vpack.c.bf16 %v759_v45, %v758_v44 }
  0xed   : > { %v567_v47 = vpop.f32.mrb[4].mxu0  ;;  %v1657_v7 = vpack.c.bf16 %v791_v3, %v790_v60 }
  0xee   : > { %v568_v48 = vadd.f32 %v1630_v33, %v567_v47  ;;  %v1244_v49 = vpop.f32.mrb[5].mxu0  ;;  %v695_v8 = vpop.f32.mrb[4].mxu1 }
  0xef   : > { %v570_v50 = vpop.f32.mrb[6].mxu0  ;;  %v696_v11 = vadd.f32 %v1630_v33, %v695_v8  ;;  %v1308_v12 = vpop.f32.mrb[5].mxu1 }
  0xf0   : > { %v571_v51 = vadd.f32 %v1630_v33, %v570_v50  ;;  %v1245_v52 = vpop.f32.mrb[7].mxu0  ;;  %v760_v54 = vmax.f32 %v568_v48, 0.0  ;;  %v698_v13 = vpop.f32.mrb[6].mxu1 }
  0xf1   : > { %v792_v15 = vmax.f32 %v696_v11, 0.0  ;;  %v699_v16 = vadd.f32 %v1630_v33, %v698_v13  ;;  %v1309_v17 = vpop.f32.mrb[7].mxu1 }
  0xf2   : > { %v761_v55 = vmax.f32 %v571_v51, 0.0  ;;  %v1678_v51 = vrot.slane %v810_v41, %v1632_v34 }
  0xf3   : > { %v793_v21 = vmax.f32 %v699_v16, 0.0 }
  0xf4   : > { %v1652_v59 = vpack.c.bf16 %v761_v55, %v760_v54 }
  0xf5   : > { %v575_v63 = vpop.f32.mrb[8].mxu0  ;;  %v1665_v25 = vpack.c.bf16 %v793_v21, %v792_v15 }
  0xf6   : > { %v576_v0 = vadd.f32 %v1630_v33, %v575_v63  ;;  %v1248_v2 = vpop.f32.mrb[9].mxu0  ;;  %v703_v26 = vpop.f32.mrb[8].mxu1 }
  0xf7   : > { %v578_v4 = vpop.f32.mrb[10].mxu0  ;;  %v704_v29 = vadd.f32 %v1630_v33, %v703_v26  ;;  %v1312_v30 = vpop.f32.mrb[9].mxu1 }
  0xf8   : > { %v579_v5 = vadd.f32 %v1630_v33, %v578_v4  ;;  %v1249_v6 = vpop.f32.mrb[11].mxu0  ;;  %v762_v9 = vmax.f32 %v576_v0, 0.0  ;;  %v706_v31 = vpop.f32.mrb[10].mxu1 }
  0xf9   : > { %v794_v36 = vmax.f32 %v704_v29, 0.0  ;;  %v707_v38 = vadd.f32 %v1630_v33, %v706_v31  ;;  %v1313_v39 = vpop.f32.mrb[11].mxu1 }
  0xfa   : > { %v763_v10 = vmax.f32 %v579_v5, 0.0 }
  0xfb   : > { %v795_v44 = vmax.f32 %v707_v38, 0.0 }
  0xfc   : > { %v1660_v14 = vpack.c.bf16 %v763_v10, %v762_v9 }
  0xfd   : > { %v583_v18 = vpop.f32.mrb[12].mxu0  ;;  %v1675_v49 = vpack.c.bf16 %v795_v44, %v794_v36 }
  0xfe   : > { %v584_v19 = vadd.f32 %v1630_v33, %v583_v18  ;;  %v1252_v20 = vpop.f32.mrb[13].mxu0  ;;  %v711_v50 = vpop.f32.mrb[12].mxu1 }
  0xff   : > { %v586_v22 = vpop.f32.mrb[14].mxu0  ;;  %v712_v54 = vadd.f32 %v1630_v33, %v711_v50  ;;  %v1316_v55 = vpop.f32.mrb[13].mxu1 }
 0x100   : > { %v587_v23 = vadd.f32 %v1630_v33, %v586_v22  ;;  %v1253_v24 = vpop.f32.mrb[15].mxu0  ;;  %v764_v27 = vmax.f32 %v584_v19, 0.0  ;;  %v714_v35 = vpop.f32.mrb[14].mxu1 }
 0x101   : > { %v796_v57 = vmax.f32 %v712_v54, 0.0  ;;  %v715_v58 = vadd.f32 %v1630_v33, %v714_v35  ;;  %v1317_v60 = vpop.f32.mrb[15].mxu1 }
 0x102   : > { %v765_v28 = vmax.f32 %v587_v23, 0.0 }
 0x103   : > { %v797_v0 = vmax.f32 %v715_v58, 0.0 }
 0x104   : > { %v1668_v32 = vpack.c.bf16 %v765_v28, %v764_v27 }
 0x105   : > { %v591_v40 = vpop.f32.mrb[16].mxu0  ;;  %v1686_v4 = vpack.c.bf16 %v797_v0, %v796_v57 }
 0x106   : > { %v592_v42 = vadd.f32 %v1630_v33, %v591_v40  ;;  %v1256_v43 = vpop.f32.mrb[17].mxu0  ;;  %v719_v5 = vpop.f32.mrb[16].mxu1 }
 0x107   : > { %v594_v45 = vpop.f32.mrb[18].mxu0  ;;  %v720_v9 = vadd.f32 %v1630_v33, %v719_v5  ;;  %v1320_v10 = vpop.f32.mrb[17].mxu1 }
 0x108   : > { %v595_v47 = vadd.f32 %v1630_v33, %v594_v45  ;;  %v1257_v48 = vpop.f32.mrb[19].mxu0  ;;  %v766_v52 = vmax.f32 %v592_v42, 0.0  ;;  %v722_v11 = vpop.f32.mrb[18].mxu1 }
 0x109   : > { %v798_v13 = vmax.f32 %v720_v9, 0.0  ;;  %v723_v15 = vadd.f32 %v1630_v33, %v722_v11  ;;  %v1321_v16 = vpop.f32.mrb[19].mxu1 }
 0x10a   : > { %v767_v53 = vmax.f32 %v595_v47, 0.0 }
 0x10b   : > { %v799_v20 = vmax.f32 %v723_v15, 0.0 }
 0x10c   : > { %v1681_v56 = vpack.c.bf16 %v767_v53, %v766_v52 }
 0x10d   : > { %v599_v61 = vpop.f32.mrb[20].mxu0  ;;  %v1694_v24 = vpack.c.bf16 %v799_v20, %v798_v13 }
 0x10e   : > { %v600_v62 = vadd.f32 %v1630_v33, %v599_v61  ;;  %v1260_v63 = vpop.f32.mrb[21].mxu0  ;;  %v727_v26 = vpop.f32.mrb[20].mxu1 }
 0x10f   : > { %v602_v2 = vpop.f32.mrb[22].mxu0  ;;  %v728_v29 = vadd.f32 %v1630_v33, %v727_v26  ;;  %v1324_v30 = vpop.f32.mrb[21].mxu1 }
 0x110   : > { %v603_v34 = vadd.f32 %v1630_v33, %v602_v2  ;;  %v1261_v3 = vpop.f32.mrb[23].mxu0  ;;  %v768_v6 = vmax.f32 %v600_v62, 0.0  ;;  %v730_v31 = vpop.f32.mrb[22].mxu1 }
 0x111   : > { %v800_v38 = vmax.f32 %v728_v29, 0.0  ;;  %v731_v39 = vadd.f32 %v1630_v33, %v730_v31  ;;  %v1325_v40 = vpop.f32.mrb[23].mxu1 }
 0x112   : > { %v769_v8 = vmax.f32 %v603_v34, 0.0 }
 0x113   : > { %v801_v44 = vmax.f32 %v731_v39, 0.0 }
 0x114   : > { %v1689_v12 = vpack.c.bf16 %v769_v8, %v768_v6 }
 0x115   : > { %v607_v17 = vpop.f32.mrb[24].mxu0  ;;  %v1702_v50 = vpack.c.bf16 %v801_v44, %v800_v38 }
 0x116   : > { %v608_v18 = vadd.f32 %v1630_v33, %v607_v17  ;;  %v1264_v19 = vpop.f32.mrb[25].mxu0  ;;  %v735_v52 = vpop.f32.mrb[24].mxu1 }
 0x117   : > { %v610_v21 = vpop.f32.mrb[26].mxu0  ;;  %v736_v55 = vadd.f32 %v1630_v33, %v735_v52  ;;  %v1328_v35 = vpop.f32.mrb[25].mxu1 }
 0x118   : > { %v611_v22 = vadd.f32 %v1630_v33, %v610_v21  ;;  %v1265_v23 = vpop.f32.mrb[27].mxu0  ;;  %v770_v27 = vmax.f32 %v608_v18, 0.0  ;;  %v738_v57 = vpop.f32.mrb[26].mxu1 }
 0x119   : > { %v802_v60 = vmax.f32 %v736_v55, 0.0  ;;  %v739_v61 = vadd.f32 %v1630_v33, %v738_v57  ;;  %v1329_v62 = vpop.f32.mrb[27].mxu1 }
 0x11a   : > { %v771_v28 = vmax.f32 %v611_v22, 0.0 }
 0x11b   : > { %v803_v34 = vmax.f32 %v739_v61, 0.0 }
 0x11c   : > { %v1697_v36 = vpack.c.bf16 %v771_v28, %v770_v27 }
 0x11d   : > { %v615_v41 = vpop.f32.mrb[28].mxu0  ;;  %v1710_v8 = vpack.c.bf16 %v803_v34, %v802_v60 }
 0x11e   : > { %v616_v42 = vadd.f32 %v1630_v33, %v615_v41  ;;  %v1268_v43 = vpop.f32.mrb[29].mxu0  ;;  %v743_v9 = vpop.f32.mrb[28].mxu1 }
 0x11f   : > { %v618_v45 = vpop.f32.mrb[30].mxu0  ;;  %v744_v13 = vadd.f32 %v1630_v33, %v743_v9  ;;  %v1332_v15 = vpop.f32.mrb[29].mxu1 }
 0x120   : > { %v619_v47 = vadd.f32 %v1630_v33, %v618_v45  ;;  %v1269_v48 = vpop.f32.mrb[31].mxu0  ;;  %v772_v53 = vmax.f32 %v616_v42, 0.0  ;;  %v746_v16 = vpop.f32.mrb[30].mxu1 }
 0x121   : > { %v804_v18 = vmax.f32 %v744_v13, 0.0  ;;  %v747_v19 = vadd.f32 %v1630_v33, %v746_v16  ;;  %v1333_v20 = vpop.f32.mrb[31].mxu1 }
 0x122   : > { %v773_v54 = vmax.f32 %v619_v47, 0.0 }
 0x123   : > { %v805_v26 = vmax.f32 %v747_v19, 0.0 }
 0x124   : > { %v1705_v58 = vpack.c.bf16 %v773_v54, %v772_v53 }
 0x125   : > { %v623_v63 = vpop.f32.mrb[32].mxu0  ;;  %v1717_v30 = vpack.c.bf16 %v805_v26, %v804_v18 }
 0x126   : > { %v624_v0 = vadd.f32 %v1630_v33, %v623_v63  ;;  %v1272_v2 = vpop.f32.mrb[33].mxu0  ;;  %v751_v31 = vpop.f32.mrb[32].mxu1 }
 0x127   : > { %v626_v3 = vpop.f32.mrb[34].mxu0  ;;  %v752_v40 = vadd.f32 %v1630_v33, %v751_v31  ;;  %v1336_v41 = vpop.f32.mrb[33].mxu1 }
 0x128   : > { %v627_v5 = vadd.f32 %v1630_v33, %v626_v3  ;;  %v1273_v6 = vpop.f32.mrb[35].mxu0  ;;  %v774_v10 = vmax.f32 %v624_v0, 0.0  ;;  %v754_v42 = vpop.f32.mrb[34].mxu1 }
 0x129   : > { %v806_v44 = vmax.f32 %v752_v40, 0.0  ;;  %v755_v45 = vadd.f32 %v1630_v33, %v754_v42  ;;  %v1337_v47 = vpop.f32.mrb[35].mxu1 }
 0x12a   : > { %v775_v11 = vmax.f32 %v627_v5, 0.0 }
 0x12b   : > { %v807_v53 = vmax.f32 %v755_v45, 0.0 }
 0x12c   : > { %v1346_v17 = vpack.c.bf16 %v775_v11, %v774_v10 }
 0x12d   : > { %v631_v21 = vpop.f32.mrb[36].mxu0  ;;  %v1724_v57 = vpack.c.bf16 %v807_v53, %v806_v44 }
 0x12e   : > { %v632_v22 = vadd.f32 %v1630_v33, %v631_v21  ;;  %v1276_v23 = vpop.f32.mrb[37].mxu0  ;;  %1347 = vmatprep.subr.bf16.mxu1 %v1346_v17 }
 0x12f   : > { %v634_v27 = vpop.f32.mrb[38].mxu0  ;;  %1349 = vmatpush3.bf16.msra.mxu1 %v1647_v46 }
 0x130   : > { %v635_v28 = vadd.f32 %v1630_v33, %v634_v27  ;;  %v1277_v29 = vpop.f32.mrb[39].mxu0  ;;  %v776_v38 = vmax.f32 %v632_v22, 0.0 }
 0x132   : > { %v777_v39 = vmax.f32 %v635_v28, 0.0 }
 0x134   : > { %v1350_v43 = vpack.c.bf16 %v777_v39, %v776_v38 }
 0x135   : > { %v639_v48 = vpop.f32.mrb[40].mxu0 }
 0x136   : > { %v640_v46 = vadd.f32 %v1630_v33, %v639_v48  ;;  %v1280_v52 = vpop.f32.mrb[41].mxu0  ;;  %1351 = vmatprep.subr.bf16.mxu1 %v1350_v43 }
 0x137   : > { %v642_v54 = vpop.f32.mrb[42].mxu0  ;;  %1353 = vmatpush3.bf16.msra.mxu1 %v1652_v59 }
 0x138   : > { %v643_v55 = vadd.f32 %v1630_v33, %v642_v54  ;;  %v1281_v35 = vpop.f32.mrb[43].mxu0  ;;  %v778_v60 = vmax.f32 %v640_v46, 0.0 }
 0x139   : > { %v826_v35 = vcombine.high %v1678_v51, %v1678_v51 }
 0x13a   : > { %v779_v61 = vmax.f32 %v643_v55, 0.0 }
 0x13c   : > { %v1354_v62 = vpack.c.bf16 %v779_v61, %v778_v60  ;;  %v1465_v60 = vmov 0.0|0.0  }
 0x13d   : > { %v647_v63 = vpop.f32.mrb[44].mxu0 }
 0x13e   : > { %v648_v0 = vadd.f32 %v1630_v33, %v647_v63  ;;  %v1284_v2 = vpop.f32.mrb[45].mxu0  ;;  %1355 = vmatprep.subr.bf16.mxu1 %v1354_v62 }
 0x13f   : > { %v650_v34 = vpop.f32.mrb[46].mxu0  ;;  %1357 = vmatpush3.bf16.msra.mxu1 %v1660_v14 }
 0x140   : > { %v651_v3 = vadd.f32 %v1630_v33, %v650_v34  ;;  %v1285_v5 = vpop.f32.mrb[47].mxu0  ;;  %v780_v59 = vmax.f32 %v648_v0, 0.0 }
 0x142   : > { %v781_v6 = vmax.f32 %v651_v3, 0.0 }
 0x144   : > { %v1358_v9 = vpack.c.bf16 %v781_v6, %v780_v59 }
 0x145   : > { %v655_v10 = vpop.f32.mrb[48].mxu0 }
 0x146   : > { %v656_v11 = vadd.f32 %v1630_v33, %v655_v10  ;;  %v1288_v13 = vpop.f32.mrb[49].mxu0  ;;  %1359 = vmatprep.subr.bf16.mxu1 %v1358_v9 }
 0x147   : > { %v658_v15 = vpop.f32.mrb[50].mxu0  ;;  %1361 = vmatpush3.bf16.msra.mxu1 %v1668_v32 }
 0x148   : > { %v659_v16 = vadd.f32 %v1630_v33, %v658_v15  ;;  %v1289_v17 = vpop.f32.mrb[51].mxu0  ;;  %v782_v18 = vmax.f32 %v656_v11, 0.0 }
 0x14a   : > { %v783_v19 = vmax.f32 %v659_v16, 0.0 }
 0x14c   : > { %v1362_v14 = vpack.c.bf16 %v783_v19, %v782_v18 }
 0x14d   : > { %v663_v20 = vpop.f32.mrb[52].mxu0 }
 0x14e   : > { %v664_v21 = vadd.f32 %v1630_v33, %v663_v20  ;;  %v1292_v22 = vpop.f32.mrb[53].mxu0  ;;  %1363 = vmatprep.subr.bf16.mxu1 %v1362_v14 }
 0x14f   : > { %v666_v23 = vpop.f32.mrb[54].mxu0  ;;  %1365 = vmatpush3.bf16.msra.mxu1 %v1681_v56 }
 0x150   : > { %v667_v26 = vadd.f32 %v1630_v33, %v666_v23  ;;  %v1293_v27 = vpop.f32.mrb[55].mxu0  ;;  %v784_v28 = vmax.f32 %v664_v21, 0.0 }
 0x152   : > { %v785_v29 = vmax.f32 %v667_v26, 0.0 }
 0x154   : > { %v1366_v32 = vpack.c.bf16 %v785_v29, %v784_v28 }
 0x155   : > { %v671_v31 = vpop.f32.mrb[56].mxu0 }
 0x156   : > { %v672_v38 = vadd.f32 %v1630_v33, %v671_v31  ;;  %v1296_v39 = vpop.f32.mrb[57].mxu0  ;;  %1367 = vmatprep.subr.bf16.mxu1 %v1366_v32 }
 0x157   : > { %v674_v40 = vpop.f32.mrb[58].mxu0  ;;  %1369 = vmatpush3.bf16.msra.mxu1 %v1689_v12 }
 0x158   : > { %v675_v41 = vadd.f32 %v1630_v33, %v674_v40  ;;  %v1297_v42 = vpop.f32.mrb[59].mxu0  ;;  %v786_v43 = vmax.f32 %v672_v38, 0.0 }
 0x15a   : > { %v787_v44 = vmax.f32 %v675_v41, 0.0 }
 0x15c   : > { %v1370_v56 = vpack.c.bf16 %v787_v44, %v786_v43 }
 0x15d   : > { %v679_v45 = vpop.f32.mrb[60].mxu0 }
 0x15e   : > { %v680_v47 = vadd.f32 %v1630_v33, %v679_v45  ;;  %v1300_v48 = vpop.f32.mrb[61].mxu0  ;;  %1371 = vmatprep.subr.bf16.mxu1 %v1370_v56 }
 0x15f   : > { %v682_v46 = vpop.f32.mrb[62].mxu0  ;;  %1373 = vmatpush3.bf16.msra.mxu1 %v1697_v36 }
 0x160   : > { %v683_v52 = vadd.f32 %v1630_v33, %v682_v46  ;;  %v1301_v53 = vpop.f32.mrb[63].mxu0  ;;  %v788_v54 = vmax.f32 %v680_v47, 0.0  ;;  %v1450_v33 = vld [vmem:[%s1780_s4] sm:$0xff]  }
 0x162   : > { %v789_v55 = vmax.f32 %v683_v52, 0.0 }
 0x164   : > { %v1374_v12 = vpack.c.bf16 %v789_v55, %v788_v54 }
 0x166   : > { %1375 = vmatprep.subr.bf16.mxu1 %v1374_v12 }
 0x167   : > { %1377 = vmatpush3.bf16.msra.mxu1 %v1705_v58 }
 0x168   : > { %1378 = vmatprep.subr.bf16.mxu1 %v1465_v60 }
 0x16a   : > { %898 = vmatmul.mubr.f32.vlgmr.msra.gmra.mrb[36].mxu1 %v1641_v37  ;;  %v1451_v37 = vld [vmem:[%s1780_s4 + $0x8] sm:$0xff]  }
 0x16b   : > { %1380 = vmatpush1.bf16.msra.mxu1 %v1657_v7  ;;  %1162 = vmatprep.mubr.msk.f32.mxu1 %vm830_vm2, %v826_v35 }
 0x16c   : > { %1381 = vmatprep.subr.bf16.mxu1 %v1465_v60 }
 0x16f   : > { %1383 = vmatpush1.bf16.msra.mxu1 %v1665_v25 }
 0x170   : > { %1384 = vmatprep.subr.bf16.mxu1 %v1465_v60 }
 0x173   : > { %1386 = vmatpush1.bf16.msra.mxu1 %v1675_v49 }
 0x174   : > { %1387 = vmatprep.subr.bf16.mxu1 %v1465_v60 }
 0x177   : > { %1389 = vmatpush1.bf16.msra.mxu1 %v1686_v4 }
 0x178   : > { %1390 = vmatprep.subr.bf16.mxu1 %v1465_v60 }
 0x17b   : > { %1392 = vmatpush1.bf16.msra.mxu1 %v1694_v24 }
 0x17c   : > { %1393 = vmatprep.subr.bf16.mxu1 %v1465_v60 }
 0x17f   : > { %1395 = vmatpush1.bf16.msra.mxu1 %v1702_v50  ;;  %v1163_v50 = vld [vmem:[%s1781_s5] ss:$0 sm:$0xff] }
 0x180   : > { %1396 = vmatprep.subr.bf16.mxu1 %v1465_v60 }
 0x183   : > { %1398 = vmatpush1.bf16.msra.mxu1 %v1710_v8 }
 0x184   : > { %1399 = vmatprep.subr.bf16.mxu1 %v1465_v60 }
 0x187   : > { %1401 = vmatpush1.bf16.msra.mxu1 %v1717_v30 }
 0x188   : > { %1402 = vmatprep.subr.bf16.mxu1 %v1465_v60 }
 0x18b   : > { %1404 = vmatpush1.bf16.msra.mxu1 %v1724_v57 }
 0x18c   : > { %1338 = vmatprep.subr.bf16.mxu1 %v1462_v1 }
 0x18e   : > { %968 = vmatmul.mubr.f32.vlgmr.msra.gmra.mrb[38].mxu1 %v1678_v51 }
 0x18f   : > { %1342 = vmatprep.mubr.msk.bf16.mxu1 %vm1463_vm0, %v1462_v1  ;;  %1339 = vmatpush3.bf16.msra.mxu1 %v1450_v33 }
 0x190   : > { %1340 = vmatprep.subr.bf16.mxu1 %v1462_v1 }
 0x193   : > { %1341 = vmatpush3.bf16.msra.mxu1 %v1451_v37 }
 0x23d   : > { %v1228_v7 = vpop.f32.mrb[36].mxu1 }
 0x23e   : > { %v1229_v25 = vpop.f32.mrb[37].mxu1 }
 0x23f   : > { %v1230_v49 = vadd.f32 %v1229_v25, %v1228_v7 }
 0x261   : > { %v969_v4 = vpop.f32.mrb[38].mxu1 }
 0x262   : > { %v970_v51 = vadd.f32 %v1230_v49, %v969_v4  ;;  %v971_v24 = vpop.f32.mrb[39].mxu1 }
 0x264   : > { %v973_v36 = vpack.c.bf16 %v970_v51, %v970_v51 }
 0x266   : > { %1343 = vmatmul.mubr.msk.bf16.vlgmr.msra.gmra.mrb[40].mxu1 %vm449_vm1, %v973_v36 }
 0x339   : > { %v1034_v1 = vpop.f32.mrb[40].mxu1 }
 0x33a   : > { %v1035_v58 = vadd.f32 %v1163_v50, %v1034_v1  ;;  %v1344_v8 = vpop.f32.mrb[41].mxu1 }
 0x33b   : > { %v1037_v30 = vpop.f32.mrb[42].mxu1 }
 0x33c   : > { %v1345_v57 = vpop.f32.mrb[43].mxu1  ;;  %v1040_v61 = vmul.f32 %v1035_v58, %v1035_v58 }
 0x33e   : > { %v1042_v62 = vsel %vm1041_vm3, %v1040_v61, 0.0 }
 0x33f   : > { %1043 = vadd.xlane.f32.xlu0 %v1042_v62 }
 0x3cc   : > { %v1044_v63 = vpop.xlane.xlu0 %1043 }
 0x3cd   : > { %v1045_v0 = vmax.f32 %v1044_v63, 1e-24 }
 0x3cf   : > { %1452 = vrsqrt.f32 %v1045_v0 }
 0x3d9   : > { %v1453_v2 = vpop.eup %1452 }
 0x3da   : > { %v1047_v34 = vmul.f32 %v1453_v2, %v1035_v58 }
 0x3dc   : > { %1048 = vst.msk [vmem:[%s249_s20] sm:$0x3] %vm1041_vm3, %v1047_v34 }
 0x3dd PF: > { %s16_s21 = sadd.s32 1, %s1460_s21  }
 0x3de   : > { %p13_p4 = scmp.ge.s32.totalorder %s16_s21, 4  }
 0x3e0   :  { %15 = sbr.rel (!%p13_p4) target bundleno = 1 (0x1), region = 74 }

</bundles_post_ra>
